<compile_context>
chip_gen: v7x
topology: tpu7x:2x2x1
jax: 0.10.0
libtpu: 0.0.40
codegen_flags: <defaults>
</compile_context>

<pallas_src>
import functools

import jax
import jax.numpy as jnp
from jax.experimental import pallas as pl
from jax.experimental.pallas import tpu as pltpu

# Lane-dense model dims (multiples of 128).
D_IN = 128
D_HID = 256
D_OUT = 128

# Max rows per grid step.  Sized against v7x's 32 MiB scoped VMEM (smallest
# budget of v5e/v6e/v7x once vmem_limit is raised); footprint ~5-6 MiB.
_MAX_TILE_B = 2048


def mlp_kernel(x_ref, w1_ref, b1_ref, w2_ref, b2_ref, o_ref):
    # x_ref:  (TB, D_IN)    f32  -> cast to bf16 here (VPU slot has slack in a
    #                              mem/MXU-bound kernel; avoids an extra HBM
    #                              pass over x in the wrapper)
    # w1_ref: (D_IN, D_HID) bf16,  b1_ref: (1, D_HID) f32
    # w2_ref: (D_HID, D_OUT) bf16, b2_ref: (1, D_OUT) f32
    # o_ref:  (TB, D_OUT)   out_dtype (bf16 by default)
    x = x_ref[...].astype(jnp.bfloat16)
    h = jnp.dot(x, w1_ref[...], preferred_element_type=jnp.float32)
    h = jnp.maximum(h + b1_ref[...], 0.0)                 # f32 bias + ReLU (VPU)
    y = jnp.dot(h.astype(jnp.bfloat16), w2_ref[...],
                preferred_element_type=jnp.float32)       # bf16 MXU, f32 accum
    o_ref[...] = (y + b2_ref[...]).astype(o_ref.dtype)    # narrow only at store


def _round_up(n, m):
    return -(-n // m) * m


def _choose_tile_b(batch, max_tile_b):
    """Adaptive batch tile: as large as allowed (HBM-roofline friendly),
    minimal padding, and >= 2 grid tiles whenever there is enough work so
    v7x's 2 TensorCores are both used (neutral on v5e/v6e)."""
    b128 = _round_up(batch, 128)
    n_tiles = max(pl.cdiv(b128, max_tile_b), 2 if b128 >= 256 else 1)
    return _round_up(pl.cdiv(b128, n_tiles), 128)


@functools.partial(jax.jit, static_argnames=("out_dtype", "max_tile_b"))
def trainer_forward(x, w1, b1, w2, b2, *, out_dtype=jnp.bfloat16,
                    max_tile_b=_MAX_TILE_B):
    """Forward pass: relu(x @ w1 + b1) @ w2 + b2, batch-tiled on the grid."""
    B = x.shape[0]
    tile_b = _choose_tile_b(B, max_tile_b)
    n_tiles = pl.cdiv(B, tile_b)
    Bp = n_tiles * tile_b

    # x stays f32 (cast happens inside the kernel).  Pad only the ragged
    # remainder of the last tile (adaptive tile keeps this < one tile).
    x_f = x.astype(jnp.float32)
    if Bp != B:
        x_f = jnp.pad(x_f, ((0, Bp - B), (0, 0)))
    w1_b = w1.astype(jnp.bfloat16)
    w2_b = w2.astype(jnp.bfloat16)
    b1_f = b1.astype(jnp.float32)
    b2_f = b2.astype(jnp.float32)

    out_itemsize = jnp.dtype(out_dtype).itemsize
    flops = 2 * Bp * (D_IN * D_HID + D_HID * D_OUT)
    bytes_accessed = (Bp * D_IN * 4                     # x (f32 in)
                      + D_IN * D_HID * 2 + D_HID * 4    # w1 bf16, b1 f32
                      + D_HID * D_OUT * 2 + D_OUT * 4   # w2 bf16, b2 f32
                      + Bp * D_OUT * out_itemsize)      # out

    # Constant-index operands: logically resident, single-buffered.
    resident = functools.partial(pl.BlockSpec, pipeline_mode=pl.Buffered(1))

    out = pl.pallas_call(
        mlp_kernel,
        out_shape=jax.ShapeDtypeStruct((Bp, D_OUT), out_dtype),
        grid=(n_tiles,),
        in_specs=[
            pl.BlockSpec((tile_b, D_IN), lambda i: (i, 0)),   # streamed x tiles
            resident((D_IN, D_HID), lambda i: (0, 0)),        # resident weights
            resident((1, D_HID), lambda i: (0, 0)),
            resident((D_HID, D_OUT), lambda i: (0, 0)),
            resident((1, D_OUT), lambda i: (0, 0)),
        ],
        out_specs=pl.BlockSpec((tile_b, D_OUT), lambda i: (i, 0)),
        compiler_params=pltpu.CompilerParams(
            dimension_semantics=("parallel",),       # shard batch tiles across TCs
            vmem_limit_bytes=32 * 1024 * 1024,       # headroom; lifts v5e's 16 MiB
        ),
        cost_estimate=pl.CostEstimate(
            flops=flops, transcendentals=0, bytes_accessed=bytes_accessed),
    )(x_f, w1_b, b1_f, w2_b, b2_f)

    return out[:B]


def init_params(key):
    k1, k2, k3, k4 = jax.random.split(key, 4)
    w1 = jax.random.normal(k1, (D_IN, D_HID), jnp.float32) * (1.0 / jnp.sqrt(D_IN))
    b1 = jax.random.normal(k2, (1, D_HID), jnp.float32) * 0.01
    w2 = jax.random.normal(k3, (D_HID, D_OUT), jnp.float32) * (1.0 / jnp.sqrt(D_HID))
    b2 = jax.random.normal(k4, (1, D_OUT), jnp.float32) * 0.01
    return w1, b1, w2, b2


if __name__ == "__main__":
    BATCH = 256  # small test: 2 grid tiles of 128 rows (exercises multi-tile path)

    key = jax.random.PRNGKey(0)
    kx, kp = jax.random.split(key)
    x = jax.random.normal(kx, (BATCH, D_IN), jnp.float32)
    w1, b1, w2, b2 = init_params(kp)

    out = trainer_forward(x, w1, b1, w2, b2)
    out = jax.block_until_ready(out)

    # Pure-JAX reference mirroring the kernel numerics (bf16 MXU inputs,
    # f32 accumulation / epilogue, narrowing only at the final output).
    x_b, w1_b, w2_b = (a.astype(jnp.bfloat16) for a in (x, w1, w2))
    h_ref = jnp.maximum(
        jnp.dot(x_b, w1_b, preferred_element_type=jnp.float32) + b1, 0.0)
    ref = jnp.dot(h_ref.astype(jnp.bfloat16), w2_b,
                  preferred_element_type=jnp.float32) + b2

    assert out.shape == (BATCH, D_OUT)
    assert out.dtype == jnp.bfloat16
    ok = jnp.allclose(out.astype(jnp.float32), ref, atol=5e-2, rtol=5e-2)
    assert ok, float(jnp.max(jnp.abs(out.astype(jnp.float32) - ref)))

    print("KERNEL_OK")
</pallas_src>

<mosaic_0001>
module attributes {stable_mosaic.version = 11 : i64} {
  func.func @mlp_kernel(%arg0: i32, %arg1: memref<128x128xf32, #tpu.memory_space<vmem>>, %arg2: memref<128x256xbf16, #tpu.memory_space<vmem>>, %arg3: memref<1x256xf32, #tpu.memory_space<vmem>>, %arg4: memref<256x128xbf16, #tpu.memory_space<vmem>>, %arg5: memref<1x128xf32, #tpu.memory_space<vmem>>, %arg6: memref<128x128xbf16, #tpu.memory_space<vmem>>) attributes {dimension_semantics = [#tpu.dimension_semantics<parallel>], iteration_bounds = array<i64: 2>, scalar_prefetch = 0 : i64, scratch_operands = 0 : i64, tpu.core_type = #tpu.core_type<tc>, window_params = [{transform_indices = @transform_0, window_bounds = array<i64: 128, 128>}, {pipeline_mode = #tpu.pipeline_mode<synchronous>, transform_indices = @transform_1, window_bounds = array<i64: 128, 256>}, {pipeline_mode = #tpu.pipeline_mode<synchronous>, transform_indices = @transform_2, window_bounds = array<i64: 1, 256>}, {pipeline_mode = #tpu.pipeline_mode<synchronous>, transform_indices = @transform_3, window_bounds = array<i64: 256, 128>}, {pipeline_mode = #tpu.pipeline_mode<synchronous>, transform_indices = @transform_4, window_bounds = array<i64: 1, 128>}, {transform_indices = @transform_5, window_bounds = array<i64: 128, 128>}]} {
    %c0 = arith.constant 0 : index
    %c0_0 = arith.constant 0 : index
    %0 = vector.load %arg1[%c0, %c0_0] : memref<128x128xf32, #tpu.memory_space<vmem>>, vector<128x128xf32>
    %1 = arith.truncf %0 : vector<128x128xf32> to vector<128x128xbf16>
    %c0_1 = arith.constant 0 : index
    %c0_2 = arith.constant 0 : index
    %2 = vector.load %arg2[%c0_1, %c0_2] : memref<128x256xbf16, #tpu.memory_space<vmem>>, vector<128x256xbf16>
    %cst = arith.constant dense<0.000000e+00> : vector<128x256xf32>
    %3 = tpu.matmul %1, %2, %cst {dimension_numbers = #tpu.dot_dimension_numbers<[1], [0], [0], [1], [0, 0, 1, 1], [], []>} : vector<128x128xbf16>, vector<128x256xbf16>, vector<128x256xf32> -> vector<128x256xf32>
    %c0_3 = arith.constant 0 : index
    %c0_4 = arith.constant 0 : index
    %4 = vector.load %arg3[%c0_3, %c0_4] : memref<1x256xf32, #tpu.memory_space<vmem>>, vector<1x256xf32>
    %5 = vector.broadcast %4 : vector<1x256xf32> to vector<128x256xf32>
    %6 = arith.addf %3, %5 : vector<128x256xf32>
    %cst_5 = arith.constant 0.000000e+00 : f32
    %7 = vector.broadcast %cst_5 : f32 to vector<128x256xf32>
    %8 = arith.maximumf %6, %7 : vector<128x256xf32>
    %9 = arith.truncf %8 : vector<128x256xf32> to vector<128x256xbf16>
    %c0_6 = arith.constant 0 : index
    %c0_7 = arith.constant 0 : index
    %10 = vector.load %arg4[%c0_6, %c0_7] : memref<256x128xbf16, #tpu.memory_space<vmem>>, vector<256x128xbf16>
    %cst_8 = arith.constant dense<0.000000e+00> : vector<128x128xf32>
    %11 = tpu.matmul %9, %10, %cst_8 {dimension_numbers = #tpu.dot_dimension_numbers<[1], [0], [0], [1], [0, 0, 1, 1], [], []>} : vector<128x256xbf16>, vector<256x128xbf16>, vector<128x128xf32> -> vector<128x128xf32>
    %c0_9 = arith.constant 0 : index
    %c0_10 = arith.constant 0 : index
    %12 = vector.load %arg5[%c0_9, %c0_10] : memref<1x128xf32, #tpu.memory_space<vmem>>, vector<1x128xf32>
    %13 = vector.broadcast %12 : vector<1x128xf32> to vector<128x128xf32>
    %14 = arith.addf %11, %13 : vector<128x128xf32>
    %15 = arith.truncf %14 : vector<128x128xf32> to vector<128x128xbf16>
    %c0_11 = arith.constant 0 : index
    %c0_12 = arith.constant 0 : index
    %16 = vector.load %arg6[%c0_11, %c0_12] : memref<128x128xbf16, #tpu.memory_space<vmem>>, vector<128x128xbf16>
    tpu.vector_store %arg6[%c0_11, %c0_12], %15 {strides = array<i32>} : memref<128x128xbf16, #tpu.memory_space<vmem>>, vector<128x128xbf16>,
    return
  }
  func.func @transform_0(%arg0: i32) -> (i32, i32) {
    %c0_i32 = arith.constant 0 : i32
    %c0_i32_0 = arith.constant 0 : i32
    return %arg0, %c0_i32 : i32, i32
  }
  func.func @transform_1(%arg0: i32) -> (i32, i32) {
    %c0_i32 = arith.constant 0 : i32
    %c0_i32_0 = arith.constant 0 : i32
    %c0_i32_1 = arith.constant 0 : i32
    return %c0_i32, %c0_i32_0 : i32, i32
  }
  func.func @transform_2(%arg0: i32) -> (i32, i32) {
    %c0_i32 = arith.constant 0 : i32
    %c0_i32_0 = arith.constant 0 : i32
    %c0_i32_1 = arith.constant 0 : i32
    return %c0_i32, %c0_i32_0 : i32, i32
  }
  func.func @transform_3(%arg0: i32) -> (i32, i32) {
    %c0_i32 = arith.constant 0 : i32
    %c0_i32_0 = arith.constant 0 : i32
    %c0_i32_1 = arith.constant 0 : i32
    return %c0_i32, %c0_i32_0 : i32, i32
  }
  func.func @transform_4(%arg0: i32) -> (i32, i32) {
    %c0_i32 = arith.constant 0 : i32
    %c0_i32_0 = arith.constant 0 : i32
    %c0_i32_1 = arith.constant 0 : i32
    return %c0_i32, %c0_i32_0 : i32, i32
  }
  func.func @transform_5(%arg0: i32) -> (i32, i32) {
    %c0_i32 = arith.constant 0 : i32
    %c0_i32_0 = arith.constant 0 : i32
    return %arg0, %c0_i32 : i32, i32
  }
}

</mosaic_0001>

<bundles_post_ra>
// kernel: trainer_forward.1
= control target key start
LH: loop header
LB: loop body
LE: loop exit
PB: predicated region body
PF: predicated region fallthrough
CT: control target
= control target key end

     0   :  { %10 = vsyncpa [#allocation3], 0  ;;  %s1576_s0 = inlined_call_operand.vmem [shape: f32[256,128], index: 0, kind: input, shape index: {}]   ;;  %s1577_s1 = inlined_call_operand.vmem [shape: bf16[128,256], index: 1, kind: input, shape index: {}]   ;;  %s1578_s2 = inlined_call_operand.vmem [shape: f32[1,256], index: 2, kind: input, shape index: {}]   ;;  %s1579_s3 = inlined_call_operand.vmem [shape: bf16[256,128], index: 3, kind: input, shape index: {}]   ;;  %s1580_s4 = inlined_call_operand.vmem [shape: f32[1,128], index: 4, kind: input, shape index: {}]   ;;  %s1581_s5 = inlined_call_operand.hbm [shape: bf16[256,128], index: 5, kind: output, shape index: {}]  }
   0x1   :  { %12 = vsyncpa [#allocation3 + $0x1], 0  ;;  %s1277_s18 = smov 0   ;;  %s1279_s19 = smov 0  }
   0x2   :  { %s1281_s20 = smov 0   ;;  %s1283_s21 = smov 0  }
   0x3 LB: > { %s1298_s22 = sadd.s32 4294967295, %s1241_s21   ;;  %s908_s23 = sadd.s32 4294967294, %s1241_s21   ;;  %s1241_s21 = sphi %s1283_s21, %s1587_s21   ;;  %s1237_s20 = sphi %s1281_s20, %s1586_s20   ;;  %s1233_s19 = sphi %s1279_s19, %s1585_s19   ;;  %s1229_s18 = sphi %s1277_s18, %s1584_s18  }
   0x4   : > { %s1302_s24 = sadd.s32 1, %s1241_s21   ;;  %s135_s25 = sadd.s32 1, %s1237_s20 }
   0x5   : > { %s132_s26 = ssub.s32 %s1241_s21, %s1302_s24  ;;  %p145_p0 = scmp.ne.s32.totalorder %s1237_s20, %s1233_s19 }
   0x6   : > { %p133_p1 = scmp.eq.s32.totalorder %s132_s26, 0  ;;  %p146_p2 = scmp.eq.s32.totalorder %s1298_s22, 1 }
   0x7   : > { %p151_p3 = scmp.ne.s32.totalorder %s1233_s19, %s1229_s18  ;;  %p152_p4 = scmp.eq.s32.totalorder %s908_s23, 1 }
   0x8   : > { %s1313_s27 = scalar_select %p133_p1, %s1237_s20, %s135_s25  }
   0x9   : > { %p1315_p5 = por %p146_p2, %p145_p0  ;;  %p1319_p6 = por %p152_p4, %p151_p3 }
   0xa   : > { %p911_p7 = scmp.ge.s32.totalorder %s1241_s21, 1  ;;  %p191_p8 = scmp.lt.s32.totalorder %s1241_s21, 3 }
   0xc   : > { %p192_p9 = pnand %p911_p7, %p191_p8 }
   0xd   : > { %v1139_v0 = vld [vmem:[%s1577_s1 + $0x4] ss:$8 sps:$4 sm:$0xff] (!%p192_p9)   ;;  %v1141_v1 = vld [vmem:[%s1577_s1] ss:$8 sps:$4 sm:$0xff] (!%p192_p9)   ;;  %v1243_v2 = vmov (!%p192_p9), 0   ;;  %s913_s25 = sshll.u32 (!%p192_p9), %s1298_s22, 4  ;;  %v269_v57 = vlaneseq (!%p192_p9) }
   0xe   : > { %195 = sbr.rel (%p192_p9) target bundleno = 560 (0x230), region = 40  ;;  %391 = vmatprep.mubr.bf16.mxu0 (!%p192_p9), %v1243_v2  ;;  %359 = vmatprep.subr.bf16.mxu0 (!%p192_p9), %v1139_v0  ;;  %v1142_v3 = vld [vmem:[%s1577_s1 + $0x14] ss:$8 sps:$4 sm:$0xff] (!%p192_p9)   ;;  %v1144_v4 = vld [vmem:[%s1577_s1 + $0x10] ss:$8 sps:$4 sm:$0xff] (!%p192_p9)   ;;  %p220_p10 = scmp.lt.s32.totalorder (!%p192_p9), %s913_s25, 31 }
   0xf   : > { %360 = vmatpush1.bf16.msra.mxu0 (!%p192_p9), %v1141_v1  ;;  %v1145_v5 = vld [vmem:[%s1577_s1 + $0x24] ss:$8 sps:$4 sm:$0xff] (!%p192_p9)   ;;  %v1147_v6 = vld [vmem:[%s1577_s1 + $0x20] ss:$8 sps:$4 sm:$0xff] (!%p192_p9)   ;;  %v1148_v7 = vld [vmem:[%s1577_s1 + $0x34] ss:$8 sps:$4 sm:$0xff] (!%p192_p9)  }
  0x10   : > { %361 = vmatprep.subr.bf16.mxu0 (!%p192_p9), %v1142_v3  ;;  %v1150_v8 = vld [vmem:[%s1577_s1 + $0x30] ss:$8 sps:$4 sm:$0xff] (!%p192_p9)   ;;  %v1151_v9 = vld [vmem:[%s1577_s1 + $0x44] ss:$8 sps:$4 sm:$0xff] (!%p192_p9)   ;;  %v1153_v10 = vld [vmem:[%s1577_s1 + $0x40] ss:$8 sps:$4 sm:$0xff] (!%p192_p9)  }
  0x11   : > { %v1154_v11 = vld [vmem:[%s1577_s1 + $0x54] ss:$8 sps:$4 sm:$0xff] (!%p192_p9)   ;;  %v1163_v12 = vld [vmem:[%s1579_s3 + $0x40] sm:$0xff] (!%p192_p9)   ;;  %v1156_v13 = vld [vmem:[%s1577_s1 + $0x50] ss:$8 sps:$4 sm:$0xff] (!%p192_p9)   ;;  %v270_v58 = vshrl.u32 (!%p192_p9), %v269_v57, 7 }
  0x12   : > { %v1164_v14 = vld [vmem:[%s1579_s3] sm:$0xff] (!%p192_p9)   ;;  %1033 = vmatprep.subr.bf16.mxu1 (!%p192_p9), %v1163_v12  ;;  %v1165_v16 = vld [vmem:[%s1579_s3 + $0x48] sm:$0xff] (!%p192_p9)   ;;  %v1167_v18 = vld [vmem:[%s1579_s3 + $0x50] sm:$0xff] (!%p192_p9)   ;;  %s216_s13 = sand.u32 (!%p192_p9), 1, %s1233_s19   ;;  %s985_s23 = sshll.u32 (!%p192_p9), %s1298_s22, 10 }
  0x13   : > { %362 = vmatpush1.bf16.msra.mxu0 (!%p192_p9), %v1144_v4  ;;  %v1157_v15 = vld [vmem:[%s1577_s1 + $0x64] ss:$8 sps:$4 sm:$0xff] (!%p192_p9)   ;;  %1034 = vmatpush3.bf16.msra.mxu1 (!%p192_p9), %v1164_v14  ;;  %v1159_v19 = vld [vmem:[%s1577_s1 + $0x60] ss:$8 sps:$4 sm:$0xff] (!%p192_p9)   ;;  %v1160_v20 = vld [vmem:[%s1577_s1 + $0x74] ss:$8 sps:$4 sm:$0xff] (!%p192_p9)   ;;  %s1528_s8 = scalar_lea.hbm (!%p192_p9), %s1581_s5, %s985_s23 }
  0x14   : > { %363 = vmatprep.subr.bf16.mxu0 (!%p192_p9), %v1145_v5  ;;  %v1166_v17 = vld [vmem:[%s1579_s3 + $0x8] sm:$0xff] (!%p192_p9)   ;;  %1035 = vmatprep.subr.bf16.mxu1 (!%p192_p9), %v1165_v16  ;;  %v1168_v21 = vld [vmem:[%s1579_s3 + $0x10] sm:$0xff] (!%p192_p9)   ;;  %v1169_v22 = vld [vmem:[%s1579_s3 + $0x58] sm:$0xff] (!%p192_p9)   ;;  %v271_v59 = vsub.s32 (!%p192_p9), 0, %v270_v58  ;;  %v275_v61 = vsub.s32 (!%p192_p9), 1, %v270_v58  ;;  %s1535_s9 = scalar_lea.sflag (!%p192_p9), [#allocation3], %s216_s13 }
  0x15   : > { %s1589_s25 = smov (!%p220_p10, %s913_s25), 31  ;;  %v1162_v23 = vld [vmem:[%s1577_s1 + $0x70] ss:$8 sps:$4 sm:$0xff]   ;;  %v1171_v27 = vld [vmem:[%s1579_s3 + $0x60] sm:$0xff]   ;;  %v1173_v30 = vld [vmem:[%s1579_s3 + $0x68] sm:$0xff]  }
  0x16   : > { %s914_s7 = sshll.u32 %s1589_s25, 3  ;;  %v1170_v26 = vld [vmem:[%s1579_s3 + $0x18] sm:$0xff]   ;;  %v1172_v29 = vld [vmem:[%s1579_s3 + $0x20] sm:$0xff]   ;;  %v1174_v52 = vld [vmem:[%s1579_s3 + $0x28] sm:$0xff]   ;;  %s912_s25 = sshll.u32 %s216_s13, 6 }
  0x17   : > { %364 = vmatpush1.bf16.msra.mxu0 %v1147_v6  ;;  %s1390_s17 = scalar_lea.vmem %s1576_s0, %s914_s7  ;;  %1036 = vmatpush3.bf16.msra.mxu1 %v1166_v17  ;;  %v1175_v53 = vld [vmem:[%s1579_s3 + $0x70] sm:$0xff]   ;;  %v1177_v55 = vld [vmem:[%s1579_s3 + $0x78] sm:$0xff]   ;;  %v267_v60 = vld [vmem:[%s1578_s2] sm:$0x3]  ;;  %s1500_s16 = scalar_lea.vmem [#allocation2], %s912_s25 }
  0x18   : > { %365 = vmatprep.subr.bf16.mxu0 %v1148_v7  ;;  %1037 = vmatprep.subr.bf16.mxu1 %v1167_v18  ;;  %v227_v24 = vld [vmem:[%s1390_s17] sm:$0xff]  ;;  %v228_v25 = vld [vmem:[%s1390_s17 + $0x8] sm:$0xff]  ;;  %v229_v31 = vld [vmem:[%s1390_s17 + $0x10] sm:$0xff]  ;;  %v1454_v62 = vrot.slane %v267_v60, %v271_v59  ;;  %v1456_v63 = vrot.slane %v267_v60, %v275_v61  ;;  %s846_s26 = sshll.u32 %s1500_s16, 4  ;;  %s1244_s7 = smov [#allocation2]   ;;  %s1530_s26 = int_to_ptr.vmem [resolvable:$true] %s846_s26 }
  0x19   : > { %v243_v28 = vpack.c.bf16 %v228_v25, %v227_v24  ;;  %v230_v32 = vld [vmem:[%s1390_s17 + $0x18] sm:$0xff]  ;;  %v231_v34 = vld [vmem:[%s1390_s17 + $0x20] sm:$0xff]  ;;  %v232_v35 = vld [vmem:[%s1390_s17 + $0x28] sm:$0xff]  ;;  %s1179_s22 = scalar_lea.vmem %s1530_s26, 1024 }
  0x1a   : > { %v244_v33 = vpack.c.bf16 %v230_v32, %v229_v31  ;;  %v245_v36 = vpack.c.bf16 %v232_v35, %v231_v34  ;;  %v233_v37 = vld [vmem:[%s1390_s17 + $0x30] sm:$0xff]  ;;  %v234_v38 = vld [vmem:[%s1390_s17 + $0x38] sm:$0xff]  ;;  %v235_v40 = vld [vmem:[%s1390_s17 + $0x40] sm:$0xff]  ;;  %p1180_p11 = scmp.ne.s32.totalorder %s1530_s26, %s1179_s22 }
  0x1b   : > { %366 = vmatpush1.bf16.msra.mxu0 %v1150_v8  ;;  %1038 = vmatpush3.bf16.msra.mxu1 %v1168_v21  ;;  %v246_v39 = vpack.c.bf16 %v234_v38, %v233_v37  ;;  %v236_v41 = vld [vmem:[%s1390_s17 + $0x48] sm:$0xff]  ;;  %v237_v43 = vld [vmem:[%s1390_s17 + $0x50] sm:$0xff]  ;;  %v238_v44 = vld [vmem:[%s1390_s17 + $0x58] sm:$0xff] }
  0x1c   : > { %367 = vmatprep.subr.bf16.mxu0 %v1151_v9  ;;  %1039 = vmatprep.subr.bf16.mxu1 %v1169_v22  ;;  %v247_v42 = vpack.c.bf16 %v236_v41, %v235_v40  ;;  %v248_v45 = vpack.c.bf16 %v238_v44, %v237_v43  ;;  %v239_v46 = vld [vmem:[%s1390_s17 + $0x60] sm:$0xff]  ;;  %v240_v47 = vld [vmem:[%s1390_s17 + $0x68] sm:$0xff]  ;;  %v241_v49 = vld [vmem:[%s1390_s17 + $0x70] sm:$0xff]  ;;  %p1181_p12 = pnand %p1180_p11, %p1315_p5 }
  0x1d   : > { %v249_v48 = vpack.c.bf16 %v240_v47, %v239_v46  ;;  %v242_v50 = vld [vmem:[%s1390_s17 + $0x78] sm:$0xff]  ;;  %v1176_v54 = vld [vmem:[%s1579_s3 + $0x30] sm:$0xff]   ;;  %s1183_s17 = sshll.u32 %s1244_s7, 4  ;;  %s1184_s17 = int_to_ptr.vmem [resolvable:$false] %s1183_s17 }
  0x1e   : > { %v250_v51 = vpack.c.bf16 %v242_v50, %v241_v49  ;;  %v1178_v56 = vld [vmem:[%s1579_s3 + $0x38] sm:$0xff]   ;;  %p1182_p13 = pneg %p1181_p12  ;;  %s1185_s10 = scalar_lea.vmem %s1184_s17, 2048 }
  0x1f   : > { %368 = vmatpush1.bf16.msra.mxu0 %v1153_v10  ;;  %1040 = vmatpush3.bf16.msra.mxu1 %v1170_v26  ;;  %p1186_p0 = scmp.lt.s32.totalorder %s1530_s26, %s1184_s17  ;;  %p1187_p1 = scmp.lt.s32.totalorder %s1185_s10, %s1179_s22 }
  0x20   : > { %369 = vmatprep.subr.bf16.mxu0 %v1154_v11  ;;  %1041 = vmatprep.subr.bf16.mxu1 %v1171_v27 }
  0x21   : > { %p1188_p2 = por %p1187_p1, %p1186_p0 }
  0x23   : > { %370 = vmatpush1.bf16.msra.mxu0 %v1156_v13  ;;  %1042 = vmatpush3.bf16.msra.mxu1 %v1172_v29  ;;  %p1189_p3 = pnand %p1188_p2, %p1182_p13 }
  0x24   : > { %371 = vmatprep.subr.bf16.mxu0 %v1157_v15  ;;  %1043 = vmatprep.subr.bf16.mxu1 %v1173_v30 }
  0x27   : > { %372 = vmatpush1.bf16.msra.mxu0 %v1159_v19  ;;  %1044 = vmatpush3.bf16.msra.mxu1 %v1174_v52 }
  0x28   : > { %373 = vmatprep.subr.bf16.mxu0 %v1160_v20  ;;  %1045 = vmatprep.subr.bf16.mxu1 %v1175_v53 }
  0x2b   : > { %374 = vmatpush1.bf16.msra.mxu0 %v1162_v23  ;;  %1046 = vmatpush3.bf16.msra.mxu1 %v1176_v54 }
  0x2c   : > { %1047 = vmatprep.subr.bf16.mxu1 %v1177_v55 }
  0x2e   : > { %392 = vmatmul.mubr.bf16.vlgmr.msra.gmra.mrb[0].mxu0 %v243_v28 }
  0x2f   : > { %401 = vmatprep.mubr.bf16.mxu0 %v1243_v2  ;;  %1048 = vmatpush3.bf16.msra.mxu1 %v1178_v56 }
  0x36   : > { %402 = vmatmul.mubr.bf16.gmra.mrb[4].mxu0 %v244_v33 }
  0x37   : > { %411 = vmatprep.mubr.bf16.mxu0 %v1243_v2 }
  0x3e   : > { %412 = vmatmul.mubr.bf16.gmra.mrb[8].mxu0 %v245_v36 }
  0x3f   : > { %421 = vmatprep.mubr.bf16.mxu0 %v1243_v2 }
  0x46   : > { %422 = vmatmul.mubr.bf16.gmra.mrb[12].mxu0 %v246_v39 }
  0x47   : > { %431 = vmatprep.mubr.bf16.mxu0 %v1243_v2 }
  0x4e   : > { %432 = vmatmul.mubr.bf16.gmra.mrb[16].mxu0 %v247_v42 }
  0x4f   : > { %441 = vmatprep.mubr.bf16.mxu0 %v1243_v2 }
  0x56   : > { %442 = vmatmul.mubr.bf16.gmra.mrb[20].mxu0 %v248_v45 }
  0x57   : > { %451 = vmatprep.mubr.bf16.mxu0 %v1243_v2 }
  0x5e   : > { %452 = vmatmul.mubr.bf16.gmra.mrb[24].mxu0 %v249_v48 }
  0x5f   : > { %461 = vmatprep.mubr.bf16.mxu0 %v1243_v2 }
  0x66   : > { %462 = vmatmul.mubr.bf16.gmra.mrb[28].mxu0 %v250_v51 }
 0x101   : > { %v393_v0 = vpop.f32.mrb[0].mxu0 }
 0x102   : > { %v394_v1 = vadd.f32 %v393_v0, %v1454_v62  ;;  %v395_v2 = vpop.f32.mrb[1].mxu0 }
 0x103   : > { %v396_v3 = vadd.f32 %v395_v2, %v1456_v63  ;;  %v397_v4 = vpop.f32.mrb[2].mxu0 }
 0x104   : > { %v398_v5 = vadd.f32 %v397_v4, %v1454_v62  ;;  %v399_v6 = vpop.f32.mrb[3].mxu0  ;;  %v472_v8 = vmax.f32 %v394_v1, 0.0 }
 0x105   : > { %v400_v7 = vadd.f32 %v399_v6, %v1456_v63  ;;  %v473_v10 = vmax.f32 %v396_v3, 0.0 }
 0x106   : > { %v474_v9 = vmax.f32 %v398_v5, 0.0 }
 0x107   : > { %v475_v11 = vmax.f32 %v400_v7, 0.0 }
 0x108   : > { %v504_v12 = vpack.c.bf16 %v474_v9, %v472_v8 }
 0x109   : > { %v403_v13 = vpop.f32.mrb[4].mxu0  ;;  %v505_v14 = vpack.c.bf16 %v475_v11, %v473_v10 }
 0x10a   : > { %v404_v15 = vadd.f32 %v403_v13, %v1454_v62  ;;  %v405_v16 = vpop.f32.mrb[5].mxu0 }
 0x10b   : > { %v406_v17 = vadd.f32 %v405_v16, %v1456_v63  ;;  %v407_v18 = vpop.f32.mrb[6].mxu0  ;;  %687 = vmatprep.mubr.bf16.mxu1 %v505_v14 }
 0x10c   : > { %v408_v19 = vadd.f32 %v407_v18, %v1454_v62  ;;  %v409_v20 = vpop.f32.mrb[7].mxu0  ;;  %688 = vmatmul.mubr.bf16.vlgmr.msra.gmra.mrb[0].mxu1 %v504_v12  ;;  %v476_v22 = vmax.f32 %v404_v15, 0.0 }
 0x10d   : > { %v410_v21 = vadd.f32 %v409_v20, %v1456_v63  ;;  %v477_v24 = vmax.f32 %v406_v17, 0.0 }
 0x10e   : > { %v478_v23 = vmax.f32 %v408_v19, 0.0 }
 0x10f   : > { %v479_v25 = vmax.f32 %v410_v21, 0.0 }
 0x110   : > { %v506_v26 = vpack.c.bf16 %v478_v23, %v476_v22 }
 0x111   : > { %v507_v27 = vpack.c.bf16 %v479_v25, %v477_v24  ;;  %v413_v28 = vpop.f32.mrb[8].mxu0 }
 0x112   : > { %v414_v29 = vadd.f32 %v413_v28, %v1454_v62  ;;  %v415_v30 = vpop.f32.mrb[9].mxu0 }
 0x113   : > { %v416_v31 = vadd.f32 %v415_v30, %v1456_v63  ;;  %v417_v32 = vpop.f32.mrb[10].mxu0  ;;  %695 = vmatprep.mubr.bf16.mxu1 %v507_v27 }
 0x114   : > { %v418_v33 = vadd.f32 %v417_v32, %v1454_v62  ;;  %v419_v34 = vpop.f32.mrb[11].mxu0  ;;  %696 = vmatmul.mubr.bf16.gmra.mrb[4].mxu1 %v506_v26  ;;  %v480_v36 = vmax.f32 %v414_v29, 0.0 }
 0x115   : > { %v420_v35 = vadd.f32 %v419_v34, %v1456_v63  ;;  %v481_v38 = vmax.f32 %v416_v31, 0.0 }
 0x116   : > { %v482_v37 = vmax.f32 %v418_v33, 0.0 }
 0x117   : > { %v483_v39 = vmax.f32 %v420_v35, 0.0 }
 0x118   : > { %v508_v40 = vpack.c.bf16 %v482_v37, %v480_v36 }
 0x119   : > { %v509_v41 = vpack.c.bf16 %v483_v39, %v481_v38  ;;  %v423_v42 = vpop.f32.mrb[12].mxu0 }
 0x11a   : > { %v424_v43 = vadd.f32 %v423_v42, %v1454_v62  ;;  %v425_v44 = vpop.f32.mrb[13].mxu0 }
 0x11b   : > { %v426_v45 = vadd.f32 %v425_v44, %v1456_v63  ;;  %v427_v46 = vpop.f32.mrb[14].mxu0  ;;  %703 = vmatprep.mubr.bf16.mxu1 %v509_v41 }
 0x11c   : > { %v428_v47 = vadd.f32 %v427_v46, %v1454_v62  ;;  %v429_v48 = vpop.f32.mrb[15].mxu0  ;;  %704 = vmatmul.mubr.bf16.gmra.mrb[8].mxu1 %v508_v40  ;;  %v484_v50 = vmax.f32 %v424_v43, 0.0 }
 0x11d   : > { %v430_v49 = vadd.f32 %v429_v48, %v1456_v63  ;;  %v485_v52 = vmax.f32 %v426_v45, 0.0 }
 0x11e   : > { %v486_v51 = vmax.f32 %v428_v47, 0.0 }
 0x11f   : > { %v487_v53 = vmax.f32 %v430_v49, 0.0 }
 0x120   : > { %v510_v54 = vpack.c.bf16 %v486_v51, %v484_v50 }
 0x121   : > { %v511_v55 = vpack.c.bf16 %v487_v53, %v485_v52  ;;  %v433_v56 = vpop.f32.mrb[16].mxu0 }
 0x122   : > { %v434_v57 = vadd.f32 %v433_v56, %v1454_v62  ;;  %v435_v58 = vpop.f32.mrb[17].mxu0 }
 0x123   : > { %v436_v59 = vadd.f32 %v435_v58, %v1456_v63  ;;  %v437_v60 = vpop.f32.mrb[18].mxu0  ;;  %711 = vmatprep.mubr.bf16.mxu1 %v511_v55 }
 0x124   : > { %v438_v61 = vadd.f32 %v437_v60, %v1454_v62  ;;  %v439_v0 = vpop.f32.mrb[19].mxu0  ;;  %712 = vmatmul.mubr.bf16.gmra.mrb[12].mxu1 %v510_v54  ;;  %v488_v2 = vmax.f32 %v434_v57, 0.0 }
 0x125   : > { %v440_v1 = vadd.f32 %v439_v0, %v1456_v63  ;;  %v489_v4 = vmax.f32 %v436_v59, 0.0 }
 0x126   : > { %v490_v3 = vmax.f32 %v438_v61, 0.0 }
 0x127   : > { %v491_v5 = vmax.f32 %v440_v1, 0.0 }
 0x128   : > { %v512_v6 = vpack.c.bf16 %v490_v3, %v488_v2 }
 0x129   : > { %v513_v7 = vpack.c.bf16 %v491_v5, %v489_v4  ;;  %v443_v8 = vpop.f32.mrb[20].mxu0 }
 0x12a   : > { %v444_v9 = vadd.f32 %v443_v8, %v1454_v62  ;;  %v445_v10 = vpop.f32.mrb[21].mxu0 }
 0x12b   : > { %v446_v11 = vadd.f32 %v445_v10, %v1456_v63  ;;  %v447_v12 = vpop.f32.mrb[22].mxu0  ;;  %719 = vmatprep.mubr.bf16.mxu1 %v513_v7 }
 0x12c   : > { %v448_v13 = vadd.f32 %v447_v12, %v1454_v62  ;;  %v449_v14 = vpop.f32.mrb[23].mxu0  ;;  %720 = vmatmul.mubr.bf16.gmra.mrb[16].mxu1 %v512_v6  ;;  %v492_v16 = vmax.f32 %v444_v9, 0.0 }
 0x12d   : > { %v450_v15 = vadd.f32 %v449_v14, %v1456_v63  ;;  %v493_v18 = vmax.f32 %v446_v11, 0.0 }
 0x12e   : > { %v494_v17 = vmax.f32 %v448_v13, 0.0 }
 0x12f   : > { %v495_v19 = vmax.f32 %v450_v15, 0.0 }
 0x130   : > { %v514_v20 = vpack.c.bf16 %v494_v17, %v492_v16 }
 0x131   : > { %v515_v21 = vpack.c.bf16 %v495_v19, %v493_v18  ;;  %v453_v22 = vpop.f32.mrb[24].mxu0 }
 0x132   : > { %v454_v23 = vadd.f32 %v453_v22, %v1454_v62  ;;  %v455_v24 = vpop.f32.mrb[25].mxu0 }
 0x133   : > { %v456_v25 = vadd.f32 %v455_v24, %v1456_v63  ;;  %v457_v26 = vpop.f32.mrb[26].mxu0  ;;  %727 = vmatprep.mubr.bf16.mxu1 %v515_v21 }
 0x134   : > { %v458_v27 = vadd.f32 %v457_v26, %v1454_v62  ;;  %v459_v28 = vpop.f32.mrb[27].mxu0  ;;  %728 = vmatmul.mubr.bf16.gmra.mrb[20].mxu1 %v514_v20  ;;  %v496_v30 = vmax.f32 %v454_v23, 0.0 }
 0x135   : > { %v460_v29 = vadd.f32 %v459_v28, %v1456_v63  ;;  %v497_v32 = vmax.f32 %v456_v25, 0.0 }
 0x136   : > { %v498_v31 = vmax.f32 %v458_v27, 0.0 }
 0x137   : > { %v499_v33 = vmax.f32 %v460_v29, 0.0 }
 0x138   : > { %v516_v34 = vpack.c.bf16 %v498_v31, %v496_v30 }
 0x139   : > { %v517_v35 = vpack.c.bf16 %v499_v33, %v497_v32  ;;  %v463_v36 = vpop.f32.mrb[28].mxu0 }
 0x13a   : > { %v464_v37 = vadd.f32 %v463_v36, %v1454_v62  ;;  %v465_v38 = vpop.f32.mrb[29].mxu0 }
 0x13b   : > { %v466_v39 = vadd.f32 %v465_v38, %v1456_v63  ;;  %v467_v40 = vpop.f32.mrb[30].mxu0  ;;  %735 = vmatprep.mubr.bf16.mxu1 %v517_v35 }
 0x13c   : > { %v468_v41 = vadd.f32 %v467_v40, %v1454_v62  ;;  %v469_v42 = vpop.f32.mrb[31].mxu0  ;;  %736 = vmatmul.mubr.bf16.gmra.mrb[24].mxu1 %v516_v34  ;;  %v500_v44 = vmax.f32 %v464_v37, 0.0  ;;  %v1494_v62 = vld [vmem:[%s1580_s4] ss:$0 sm:$0xff] }
 0x13d   : > { %v470_v43 = vadd.f32 %v469_v42, %v1456_v63  ;;  %v501_v46 = vmax.f32 %v466_v39, 0.0 }
 0x13e   : > { %v502_v45 = vmax.f32 %v468_v41, 0.0 }
 0x13f   : > { %v503_v47 = vmax.f32 %v470_v43, 0.0 }
 0x140   : > { %v518_v48 = vpack.c.bf16 %v502_v45, %v500_v44 }
 0x141   : > { %v519_v49 = vpack.c.bf16 %v503_v47, %v501_v46 }
 0x143   : > { %743 = vmatprep.mubr.bf16.mxu1 %v519_v49 }
 0x144   : > { %744 = vmatmul.mubr.bf16.gmra.mrb[28].mxu1 %v518_v48 }
 0x1df   : > { %v1049_v50 = vpop.f32.mrb[0].mxu1 }
 0x1e0   : > { %v1050_v51 = vpop.f32.mrb[1].mxu1 }
 0x1e1   : > { %v1051_v52 = vadd.f32 %v1050_v51, %v1049_v50  ;;  %v1052_v53 = vpop.f32.mrb[2].mxu1 }
 0x1e2   : > { %v1053_v63 = vpop.f32.mrb[3].mxu1 }
 0x1e3   : > { %v1054_v54 = vadd.f32 %v1053_v63, %v1052_v53  ;;  %v690_v55 = vadd.f32 %v1051_v52, %v1494_v62 }
 0x1e5   : > { %v693_v56 = vadd.f32 %v1054_v54, %v1494_v62 }
 0x1e7   : > { %v989_v57 = vpack.c.bf16 %v693_v56, %v690_v55  ;;  %v1055_v58 = vpop.f32.mrb[4].mxu1 }
 0x1e8   : > { %v1056_v59 = vpop.f32.mrb[5].mxu1 }
 0x1e9   : > { %990 = vst [vmem:[%s1500_s16] sm:$0xff] %v989_v57   ;;  %v1057_v60 = vadd.f32 %v1056_v59, %v1055_v58  ;;  %v1058_v61 = vpop.f32.mrb[6].mxu1 }
 0x1ea   : > { %v1059_v0 = vpop.f32.mrb[7].mxu1 }
 0x1eb   : > { %v1060_v1 = vadd.f32 %v1059_v0, %v1058_v61  ;;  %v698_v2 = vadd.f32 %v1057_v60, %v1494_v62 }
 0x1ed   : > { %v701_v3 = vadd.f32 %v1060_v1, %v1494_v62 }
 0x1ef   : > { %v994_v4 = vpack.c.bf16 %v701_v3, %v698_v2  ;;  %v1061_v5 = vpop.f32.mrb[8].mxu1 }
 0x1f0   : > { %v1062_v6 = vpop.f32.mrb[9].mxu1 }
 0x1f1   : > { %1026 = vst [vmem:[%s1500_s16 + $0x8] sm:$0xff] %v994_v4   ;;  %v1063_v7 = vadd.f32 %v1062_v6, %v1061_v5  ;;  %v1064_v8 = vpop.f32.mrb[10].mxu1 }
 0x1f2   : > { %v1065_v9 = vpop.f32.mrb[11].mxu1 }
 0x1f3   : > { %v1066_v10 = vadd.f32 %v1065_v9, %v1064_v8  ;;  %v706_v11 = vadd.f32 %v1063_v7, %v1494_v62 }
 0x1f5   : > { %v709_v12 = vadd.f32 %v1066_v10, %v1494_v62 }
 0x1f7   : > { %v999_v13 = vpack.c.bf16 %v709_v12, %v706_v11  ;;  %v1067_v14 = vpop.f32.mrb[12].mxu1 }
 0x1f8   : > { %v1068_v15 = vpop.f32.mrb[13].mxu1 }
 0x1f9   : > { %1027 = vst [vmem:[%s1500_s16 + $0x10] sm:$0xff] %v999_v13   ;;  %v1069_v16 = vadd.f32 %v1068_v15, %v1067_v14  ;;  %v1070_v17 = vpop.f32.mrb[14].mxu1 }
 0x1fa   : > { %v1071_v18 = vpop.f32.mrb[15].mxu1 }
 0x1fb   : > { %v1072_v19 = vadd.f32 %v1071_v18, %v1070_v17  ;;  %v714_v20 = vadd.f32 %v1069_v16, %v1494_v62 }
 0x1fd   : > { %v717_v21 = vadd.f32 %v1072_v19, %v1494_v62 }
 0x1ff   : > { %v1004_v22 = vpack.c.bf16 %v717_v21, %v714_v20  ;;  %v1073_v23 = vpop.f32.mrb[16].mxu1 }
 0x200   : > { %v1074_v24 = vpop.f32.mrb[17].mxu1 }
 0x201   : > { %1028 = vst [vmem:[%s1500_s16 + $0x18] sm:$0xff] %v1004_v22   ;;  %v1075_v25 = vadd.f32 %v1074_v24, %v1073_v23  ;;  %v1076_v26 = vpop.f32.mrb[18].mxu1 }
 0x202   : > { %v1077_v27 = vpop.f32.mrb[19].mxu1 }
 0x203   : > { %v1078_v28 = vadd.f32 %v1077_v27, %v1076_v26  ;;  %v722_v29 = vadd.f32 %v1075_v25, %v1494_v62 }
 0x205   : > { %v725_v30 = vadd.f32 %v1078_v28, %v1494_v62 }
 0x207   : > { %v1009_v31 = vpack.c.bf16 %v725_v30, %v722_v29  ;;  %v1079_v32 = vpop.f32.mrb[20].mxu1 }
 0x208   : > { %v1080_v33 = vpop.f32.mrb[21].mxu1 }
 0x209   : > { %1029 = vst [vmem:[%s1500_s16 + $0x20] sm:$0xff] %v1009_v31   ;;  %v1081_v34 = vadd.f32 %v1080_v33, %v1079_v32  ;;  %v1082_v35 = vpop.f32.mrb[22].mxu1 }
 0x20a   : > { %v1083_v36 = vpop.f32.mrb[23].mxu1 }
 0x20b   : > { %v1084_v37 = vadd.f32 %v1083_v36, %v1082_v35  ;;  %v730_v38 = vadd.f32 %v1081_v34, %v1494_v62 }
 0x20d   : > { %v733_v39 = vadd.f32 %v1084_v37, %v1494_v62 }
 0x20f   : > { %v1014_v40 = vpack.c.bf16 %v733_v39, %v730_v38  ;;  %v1085_v41 = vpop.f32.mrb[24].mxu1 }
 0x210   : > { %v1086_v42 = vpop.f32.mrb[25].mxu1 }
 0x211   : > { %1030 = vst [vmem:[%s1500_s16 + $0x28] sm:$0xff] %v1014_v40   ;;  %v1087_v43 = vadd.f32 %v1086_v42, %v1085_v41  ;;  %v1088_v44 = vpop.f32.mrb[26].mxu1 }
 0x212   : > { %v1089_v45 = vpop.f32.mrb[27].mxu1 }
 0x213   : > { %v1090_v46 = vadd.f32 %v1089_v45, %v1088_v44  ;;  %v738_v47 = vadd.f32 %v1087_v43, %v1494_v62 }
 0x215   : > { %v741_v48 = vadd.f32 %v1090_v46, %v1494_v62 }
 0x217   : > { %v1019_v49 = vpack.c.bf16 %v741_v48, %v738_v47  ;;  %v1091_v50 = vpop.f32.mrb[28].mxu1 }
 0x218   : > { %v1092_v51 = vpop.f32.mrb[29].mxu1 }
 0x219   : > { %1031 = vst [vmem:[%s1500_s16 + $0x30] sm:$0xff] %v1019_v49   ;;  %v1093_v52 = vadd.f32 %v1092_v51, %v1091_v50  ;;  %v1094_v53 = vpop.f32.mrb[30].mxu1 }
 0x21a   : > { %v1095_v63 = vpop.f32.mrb[31].mxu1 }
 0x21b   : > { %v1096_v54 = vadd.f32 %v1095_v63, %v1094_v53  ;;  %v746_v55 = vadd.f32 %v1093_v52, %v1494_v62 }
 0x21d   : > { %v749_v56 = vadd.f32 %v1096_v54, %v1494_v62 }
 0x21f   : > { %v1024_v57 = vpack.c.bf16 %v749_v56, %v746_v55 }
 0x221   : > { %1032 = vst [vmem:[%s1500_s16 + $0x38] sm:$0xff] %v1024_v57  }
 0x222   : > { %1192 = shalt.err (!%p1189_p3)
}
 0x223   : > { %s1193_s11 = scalar_lea.hbm %s1528_s8, 1024  ;;  %s1197_s14 = scalar_lea.hbm %s1581_s5, 2048 }
 0x224   : > { %p1194_p4 = scmp.ne.s32.totalorder %s1528_s8, %s1193_s11  ;;  %p1198_p9 = scmp.lt.u32.totalorder %s1528_s8, %s1581_s5 }
 0x225   : > { %p1199_p10 = scmp.lt.u32.totalorder %s1197_s14, %s1193_s11  ;;  %p1201_p12 = scmp.lt.u32.totalorder %s1193_s11, %s1528_s8 }
 0x226   : > { %p1195_p7 = pnand %p1194_p4, %p1315_p5 }
 0x227   : > { %p1200_p11 = por %p1199_p10, %p1198_p9 }
 0x228   : > { %p1196_p8 = pneg %p1195_p7 }
 0x229   : > { %p1202_p13 = por %p1201_p12, %p1200_p11 }
 0x22b   : > { %p1203_p0 = pnand %p1202_p13, %p1196_p8 }
 0x22d   : > { %1206 = shalt.err (!%p1203_p0)
}
 0x22e   : > { %s1245_s16 = smov 64   ;;  %s1246_s23 = smov 4  }
 0x22f   : > { %1097 = dma.vmem_to_hbm [thread:$0]  (%p1315_p5), %s1530_s26, 1024, %s1528_s8, %s1535_s9, %s1245_s16, %s1245_s16, %s1246_s23  }
 0x230 PF: > { %p1103_p1 = scmp.ge.s32.totalorder %s1241_s21, 2  ;;  %s861_s30 = sand.u32 1, %s1229_s18  }
 0x231   : > { %s862_s6 = scalar_lea.sflag [#allocation3], %s861_s30 }
 0x232   : > { %p1100_p2 = pnand %p1103_p1, %p1319_p6 }
 0x234   : > { %1224 = dma.done.wait (!%p1100_p2), %s862_s6, 1024  }
 0x235   : > { %1226 = vsyncadd (!%p1100_p2), %s862_s6, 4294966272  ;;  %p15_p3 = scmp.ge.s32.totalorder %s1302_s24, 4   ;;  %s1584_s18 = smov %s1233_s19 }
 0x236   : > { %s1585_s19 = smov %s1237_s20  ;;  %s1586_s20 = smov %s1313_s27 }
 0x237   : > { %s1587_s21 = smov %s1302_s24  ;;  %17 = sbr.rel (!%p15_p3) target bundleno = 3 (0x3), region = 75 }
 0x23e   :  { %867 = vsyncpa [#allocation3], 1 }
 0x23f   :  { %869 = vsyncpa [#allocation3 + $0x1], 1 }

</bundles_post_ra>
